<compile_context>
chip_gen: v5e
topology: v5e:2x2
jax: 0.10.0
libtpu: 0.0.40
codegen_flags: <defaults>
</compile_context>

<pallas_src>
import functools

import jax
import jax.numpy as jnp
from jax import lax
from jax.experimental import pallas as pl
from jax.experimental.pallas import tpu as pltpu

PEAK_THRESHOLD = 0.3   # the `0.3` passed to detect_peaks_torch
_BIG = 1e30            # sentinel for masked min/max reductions


def _round_up(x, m):
    return ((x + m - 1) // m) * m


def _peak_rate_kernel(sig_ref, time_ref, out_ref,
                      n_acc, tfirst_acc, tlast_acc,
                      carry_last, carry_prev2, carry_time,
                      *, t_real, tt):
    """One (TB, TT) tile: peak detection + running (n, t_first, t_last) reduction."""
    kt = pl.program_id(1)
    nt = pl.num_programs(1)

    @pl.when(kt == 0)
    def _init():
        n_acc[...] = jnp.zeros_like(n_acc)
        tfirst_acc[...] = jnp.full_like(tfirst_acc, _BIG)
        tlast_acc[...] = jnp.full_like(tlast_acc, -_BIG)

    sig = sig_ref[...]          # (TB, TT) f32
    t_s = time_ref[...]         # (TB, TT) f32, seconds
    tb = sig.shape[0]

    # ---- interior columns of this tile: local col in [1, TT-2], global col <= T-2 ----
    lc = lax.broadcasted_iota(jnp.int32, (tb, tt), 1)
    hi = jnp.minimum(jnp.int32(tt - 2), jnp.int32(t_real - 2) - kt * tt)

    # Circular neighbors via XLU rotations; wrap-around columns are masked out below,
    # so the {shift=1, shift=TT-1} pair covers {left, right} regardless of direction.
    nb1 = pltpu.roll(sig, shift=1, axis=1)
    nb2 = pltpu.roll(sig, shift=tt - 1, axis=1)
    peak = ((sig > nb1) & (sig > nb2) & (sig > PEAK_THRESHOLD)
            & (lc >= 1) & (lc <= hi))

    n_acc[...] += jnp.sum(peak.astype(jnp.float32), axis=-1, keepdims=True)
    tfirst_acc[...] = jnp.minimum(
        tfirst_acc[...],
        jnp.min(jnp.where(peak, t_s, _BIG), axis=-1, keepdims=True))
    tlast_acc[...] = jnp.maximum(
        tlast_acc[...],
        jnp.max(jnp.where(peak, t_s, -_BIG), axis=-1, keepdims=True))

    # ---- tile-boundary columns (1-sample halo carried from the previous time tile) ----
    @pl.when(kt > 0)
    def _boundary():
        s0 = sig[:, 0:1]            # global col kt*tt      (real data, see wrapper padding)
        s1 = sig[:, 1:2]            # global col kt*tt + 1
        t0 = t_s[:, 0:1]
        cl = carry_last[...]        # sig  at global col kt*tt - 1
        cp = carry_prev2[...]       # sig  at global col kt*tt - 2
        ct = carry_time[...]        # time at global col kt*tt - 1

        # deferred check: last column of the PREVIOUS tile (its right neighbor is s0)
        d_f = ((cl > cp) & (cl > s0) & (cl > PEAK_THRESHOLD)).astype(jnp.float32)
        # first column of THIS tile (valid only if its global index <= t_real - 2)
        gate = jnp.clip(jnp.int32(t_real - 1) - kt * tt, 0, 1).astype(jnp.float32)
        c_f = ((s0 > cl) & (s0 > s1) & (s0 > PEAK_THRESHOLD)).astype(jnp.float32) * gate

        n_acc[...] += d_f + c_f
        tfirst_acc[...] = jnp.minimum(
            tfirst_acc[...],
            jnp.minimum(jnp.where(d_f > 0.5, ct, _BIG),
                        jnp.where(c_f > 0.5, t0, _BIG)))
        tlast_acc[...] = jnp.maximum(
            tlast_acc[...],
            jnp.maximum(jnp.where(d_f > 0.5, ct, -_BIG),
                        jnp.where(c_f > 0.5, t0, -_BIG)))

    # carry the last two samples of this tile for the next time tile
    carry_last[...] = sig[:, tt - 1:tt]
    carry_prev2[...] = sig[:, tt - 2:tt - 1]
    carry_time[...] = t_s[:, tt - 1:tt]

    @pl.when(kt == nt - 1)
    def _finalize():
        n = n_acc[...]
        dt_s = tlast_acc[...] - tfirst_acc[...]     # seconds between first & last peak
        # rate[bpm] = 60000 / mean_IBI_ms = 60 * (n_peaks - 1) / dt_s
        rate = jnp.where(n >= 2.0,
                         60.0 * (n - 1.0) / jnp.maximum(dt_s, 1e-6),
                         0.0)
        out_ref[...] = rate.astype(out_ref.dtype)


def peakbased_detector_forward(signal, times):
    """signal, times: (B, T) -> (B,) f32 rate (heart-rate style wave property)."""
    signal = jnp.asarray(signal, jnp.float32)
    times = jnp.asarray(times, jnp.float32)
    B, T = signal.shape

    # --- tile sizing: double-buffered working set (2 inputs x 2 buffers) ~<= 8 MiB,
    #     safe under the default scoped-VMEM limit on v5e/v6e/v7x ---
    TT = min(_round_up(T, 128), 2048)                      # lane (time) tile
    max_tb = max(8, ((512 * 1024) // TT) // 8 * 8)         # TB*TT*4B*4 <= 8 MiB
    TB = min(_round_up(B, 8), max_tb)                      # sublane (batch) tile

    B_pad = _round_up(B, TB)
    T_pad = _round_up(T, TT)
    if (B_pad, T_pad) != (B, T):
        signal = jnp.pad(signal, ((0, B_pad - B), (0, T_pad - T)))
        times = jnp.pad(times, ((0, B_pad - B), (0, T_pad - T)))

    grid = (B_pad // TB, T_pad // TT)
    kernel = functools.partial(_peak_rate_kernel, t_real=T, tt=TT)

    out = pl.pallas_call(
        kernel,
        out_shape=jax.ShapeDtypeStruct((B_pad, 1), jnp.float32),
        grid_spec=pltpu.PrefetchScalarGridSpec(
            num_scalar_prefetch=0,
            grid=grid,
            in_specs=[
                pl.BlockSpec((TB, TT), lambda ib, kt: (ib, kt)),
                pl.BlockSpec((TB, TT), lambda ib, kt: (ib, kt)),
            ],
            out_specs=pl.BlockSpec((TB, 1), lambda ib, kt: (ib, 0)),
            scratch_shapes=[pltpu.VMEM((TB, 1), jnp.float32) for _ in range(6)],
        ),
        compiler_params=pltpu.CompilerParams(
            dimension_semantics=("parallel", "arbitrary")),
    )(signal, times)
    return out[:B, 0]


class PeakbasedDetectorPallas:
    def __init__(self, target_name, signal_fps):
        self.target_name = target_name
        self.signal_fps = signal_fps
        # nn.Conv1d(1, 1, 1) from the reference __init__ — never called in forward.
        self.dummy_conv_weight = jnp.ones((1, 1, 1), jnp.float32)
        self.dummy_conv_bias = jnp.zeros((1,), jnp.float32)

    def __call__(self, signal, times):
        rates = peakbased_detector_forward(signal, times)
        if isinstance(self.target_name, list):
            # TODO(synk): only the mean-IBI rate property is implemented; the reference
            #             returns a distinct property per key of get_wave_properties_torch.
            return {key: rates for key in self.target_name}
        return rates   # (B,) — matches torch.tensor(res_list) for a single target


if __name__ == "__main__":
    key = jax.random.PRNGKey(0)
    B, T = 2, 256
    signal_fps = 30.0

    # Deterministic synthetic pulse-like signals with peaks above 0.3.
    t_sec = jnp.arange(T, dtype=jnp.float32) / signal_fps            # (T,) seconds
    times = jnp.broadcast_to(t_sec, (B, T))                          # (B, T)
    freqs = jnp.array([1.2, 1.7], jnp.float32)[:, None]              # ~72 / ~102 bpm
    noise = 0.05 * jax.random.normal(key, (B, T), jnp.float32)
    signal = jnp.sin(2.0 * jnp.pi * freqs * t_sec[None, :]) + noise  # (B, T)

    detector = PeakbasedDetectorPallas(target_name="hr", signal_fps=signal_fps)
    out = detector(signal, times)
    out = jax.block_until_ready(out)
    assert out.shape == (B,) and out.dtype == jnp.float32
    print("KERNEL_OK")
</pallas_src>

<mosaic_0001>
module attributes {stable_mosaic.version = 11 : i64} {
  func.func @_peak_rate_kernel(%arg0: i32, %arg1: i32, %arg2: memref<8x256xf32, #tpu.memory_space<vmem>>, %arg3: memref<8x256xf32, #tpu.memory_space<vmem>>, %arg4: memref<8x1xf32, #tpu.memory_space<vmem>>, %arg5: memref<8x1xf32, #tpu.memory_space<vmem>>, %arg6: memref<8x1xf32, #tpu.memory_space<vmem>>, %arg7: memref<8x1xf32, #tpu.memory_space<vmem>>, %arg8: memref<8x1xf32, #tpu.memory_space<vmem>>, %arg9: memref<8x1xf32, #tpu.memory_space<vmem>>, %arg10: memref<8x1xf32, #tpu.memory_space<vmem>>) attributes {dimension_semantics = [#tpu.dimension_semantics<parallel>, #tpu.dimension_semantics<arbitrary>], iteration_bounds = array<i64: 1, 1>, scalar_prefetch = 0 : i64, scratch_operands = 6 : i64, tpu.core_type = #tpu.core_type<tc>, window_params = [{transform_indices = @transform_0, window_bounds = array<i64: 8, 256>}, {transform_indices = @transform_1, window_bounds = array<i64: 8, 256>}, {transform_indices = @transform_2, window_bounds = array<i64: 8, 1>}]} {
    %c0_i32 = arith.constant 0 : i32
    %0 = arith.cmpi eq, %arg1, %c0_i32 : i32
    %1 = arith.extui %0 : i1 to i32
    %c0_i32_0 = arith.constant 0 : i32
    %2 = arith.cmpi ne, %1, %c0_i32_0 : i32
    scf.if %2 {
      %cst_33 = arith.constant 0.000000e+00 : f32
      %56 = vector.broadcast %cst_33 : f32 to vector<8x1xf32>
      %c0_34 = arith.constant 0 : index
      %c0_35 = arith.constant 0 : index
      %57 = vector.load %arg5[%c0_34, %c0_35] : memref<8x1xf32, #tpu.memory_space<vmem>>, vector<8x1xf32>
      tpu.vector_store %arg5[%c0_34, %c0_35], %56 {strides = array<i32>} : memref<8x1xf32, #tpu.memory_space<vmem>>, vector<8x1xf32>,
      %cst_36 = arith.constant 1.000000e+30 : f32
      %58 = vector.broadcast %cst_36 : f32 to vector<8x1xf32>
      %c0_37 = arith.constant 0 : index
      %c0_38 = arith.constant 0 : index
      %59 = vector.load %arg6[%c0_37, %c0_38] : memref<8x1xf32, #tpu.memory_space<vmem>>, vector<8x1xf32>
      tpu.vector_store %arg6[%c0_37, %c0_38], %58 {strides = array<i32>} : memref<8x1xf32, #tpu.memory_space<vmem>>, vector<8x1xf32>,
      %cst_39 = arith.constant -1.000000e+30 : f32
      %60 = vector.broadcast %cst_39 : f32 to vector<8x1xf32>
      %c0_40 = arith.constant 0 : index
      %c0_41 = arith.constant 0 : index
      %61 = vector.load %arg7[%c0_40, %c0_41] : memref<8x1xf32, #tpu.memory_space<vmem>>, vector<8x1xf32>
      tpu.vector_store %arg7[%c0_40, %c0_41], %60 {strides = array<i32>} : memref<8x1xf32, #tpu.memory_space<vmem>>, vector<8x1xf32>,
    } else {
    }
    %c0 = arith.constant 0 : index
    %c0_1 = arith.constant 0 : index
    %3 = vector.load %arg2[%c0, %c0_1] : memref<8x256xf32, #tpu.memory_space<vmem>>, vector<8x256xf32>
    %c0_2 = arith.constant 0 : index
    %c0_3 = arith.constant 0 : index
    %4 = vector.load %arg3[%c0_2, %c0_3] : memref<8x256xf32, #tpu.memory_space<vmem>>, vector<8x256xf32>
    %5 = tpu.iota {dimensions = array<i32: 1>} : vector<8x256xi32>
    %c256_i32 = arith.constant 256 : i32
    %6 = arith.muli %arg1, %c256_i32 : i32
    %c254_i32 = arith.constant 254 : i32
    %7 = arith.subi %c254_i32, %6 : i32
    %c254_i32_4 = arith.constant 254 : i32
    %8 = arith.minsi %c254_i32_4, %7 : i32
    %c1_i32 = arith.constant 1 : i32
    %9 = tpu.dynamic_rotate %3 by %c1_i32 dim 1 : vector<8x256xf32>, i32 -> vector<8x256xf32>
    %c255_i32 = arith.constant 255 : i32
    %10 = tpu.dynamic_rotate %3 by %c255_i32 dim 1 : vector<8x256xf32>, i32 -> vector<8x256xf32>
    %11 = arith.cmpf ogt, %3, %9 : vector<8x256xf32>
    %12 = arith.cmpf ogt, %3, %10 : vector<8x256xf32>
    %13 = arith.andi %11, %12 : vector<8x256xi1>
    %cst = arith.constant 3.000000e-01 : f32
    %14 = vector.broadcast %cst : f32 to vector<8x256xf32>
    %15 = arith.cmpf ogt, %3, %14 : vector<8x256xf32>
    %16 = arith.andi %13, %15 : vector<8x256xi1>
    %c1_i32_5 = arith.constant 1 : i32
    %17 = vector.broadcast %c1_i32_5 : i32 to vector<8x256xi32>
    %18 = arith.cmpi sge, %5, %17 : vector<8x256xi32>
    %19 = arith.andi %16, %18 : vector<8x256xi1>
    %20 = vector.broadcast %8 : i32 to vector<8x256xi32>
    %21 = arith.cmpi sle, %5, %20 : vector<8x256xi32>
    %22 = arith.andi %19, %21 : vector<8x256xi1>
    %c0_6 = arith.constant 0 : index
    %c0_7 = arith.constant 0 : index
    %23 = vector.load %arg5[%c0_6, %c0_7] : memref<8x1xf32, #tpu.memory_space<vmem>>, vector<8x1xf32>
    %24 = arith.extui %22 : vector<8x256xi1> to vector<8x256xi32>
    %25 = arith.sitofp %24 : vector<8x256xi32> to vector<8x256xf32>
    %cst_8 = arith.constant dense<0.000000e+00> : vector<8xf32>
    %26 = vector.multi_reduction <add>, %25, %cst_8 [1] : vector<8x256xf32> to vector<8xf32>
    %27 = vector.shape_cast %26 : vector<8xf32> to vector<8x1xf32>
    %28 = arith.addf %23, %27 : vector<8x1xf32>
    %c0_9 = arith.constant 0 : index
    %c0_10 = arith.constant 0 : index
    %29 = vector.load %arg5[%c0_9, %c0_10] : memref<8x1xf32, #tpu.memory_space<vmem>>, vector<8x1xf32>
    tpu.vector_store %arg5[%c0_9, %c0_10], %28 {strides = array<i32>} : memref<8x1xf32, #tpu.memory_space<vmem>>, vector<8x1xf32>,
    %c0_11 = arith.constant 0 : index
    %c0_12 = arith.constant 0 : index
    %30 = vector.load %arg6[%c0_11, %c0_12] : memref<8x1xf32, #tpu.memory_space<vmem>>, vector<8x1xf32>
    %cst_13 = arith.constant 1.000000e+30 : f32
    %31 = vector.broadcast %cst_13 : f32 to vector<8x256xf32>
    %32 = arith.select %22, %4, %31 : vector<8x256xi1>, vector<8x256xf32>
    %cst_14 = arith.constant dense<0x7F800000> : vector<8xf32>
    %33 = vector.multi_reduction <minimumf>, %32, %cst_14 [1] : vector<8x256xf32> to vector<8xf32>
    %34 = vector.shape_cast %33 : vector<8xf32> to vector<8x1xf32>
    %35 = arith.minimumf %30, %34 : vector<8x1xf32>
    %c0_15 = arith.constant 0 : index
    %c0_16 = arith.constant 0 : index
    %36 = vector.load %arg6[%c0_15, %c0_16] : memref<8x1xf32, #tpu.memory_space<vmem>>, vector<8x1xf32>
    tpu.vector_store %arg6[%c0_15, %c0_16], %35 {strides = array<i32>} : memref<8x1xf32, #tpu.memory_space<vmem>>, vector<8x1xf32>,
    %c0_17 = arith.constant 0 : index
    %c0_18 = arith.constant 0 : index
    %37 = vector.load %arg7[%c0_17, %c0_18] : memref<8x1xf32, #tpu.memory_space<vmem>>, vector<8x1xf32>
    %cst_19 = arith.constant -1.000000e+30 : f32
    %38 = vector.broadcast %cst_19 : f32 to vector<8x256xf32>
    %39 = arith.select %22, %4, %38 : vector<8x256xi1>, vector<8x256xf32>
    %cst_20 = arith.constant dense<0xFF800000> : vector<8xf32>
    %40 = vector.multi_reduction <maximumf>, %39, %cst_20 [1] : vector<8x256xf32> to vector<8xf32>
    %41 = vector.shape_cast %40 : vector<8xf32> to vector<8x1xf32>
    %42 = arith.maximumf %37, %41 : vector<8x1xf32>
    %c0_21 = arith.constant 0 : index
    %c0_22 = arith.constant 0 : index
    %43 = vector.load %arg7[%c0_21, %c0_22] : memref<8x1xf32, #tpu.memory_space<vmem>>, vector<8x1xf32>
    tpu.vector_store %arg7[%c0_21, %c0_22], %42 {strides = array<i32>} : memref<8x1xf32, #tpu.memory_space<vmem>>, vector<8x1xf32>,
    %c0_i32_23 = arith.constant 0 : i32
    %44 = arith.cmpi sgt, %arg1, %c0_i32_23 : i32
    %45 = arith.extui %44 : i1 to i32
    %c0_i32_24 = arith.constant 0 : i32
    %46 = arith.cmpi ne, %45, %c0_i32_24 : i32
    scf.if %46 {
      %56 = vector.extract_strided_slice %3 {offsets = [0, 0], sizes = [8, 1], strides = [1, 1]} : vector<8x256xf32> to vector<8x1xf32>
      %57 = vector.extract_strided_slice %3 {offsets = [0, 1], sizes = [8, 1], strides = [1, 1]} : vector<8x256xf32> to vector<8x1xf32>
      %58 = vector.extract_strided_slice %4 {offsets = [0, 0], sizes = [8, 1], strides = [1, 1]} : vector<8x256xf32> to vector<8x1xf32>
      %c0_33 = arith.constant 0 : index
      %c0_34 = arith.constant 0 : index
      %59 = vector.load %arg8[%c0_33, %c0_34] : memref<8x1xf32, #tpu.memory_space<vmem>>, vector<8x1xf32>
      %c0_35 = arith.constant 0 : index
      %c0_36 = arith.constant 0 : index
      %60 = vector.load %arg9[%c0_35, %c0_36] : memref<8x1xf32, #tpu.memory_space<vmem>>, vector<8x1xf32>
      %c0_37 = arith.constant 0 : index
      %c0_38 = arith.constant 0 : index
      %61 = vector.load %arg10[%c0_37, %c0_38] : memref<8x1xf32, #tpu.memory_space<vmem>>, vector<8x1xf32>
      %62 = arith.cmpf ogt, %59, %60 : vector<8x1xf32>
      %63 = arith.cmpf ogt, %59, %56 : vector<8x1xf32>
      %64 = arith.andi %62, %63 : vector<8x1xi1>
      %cst_39 = arith.constant 3.000000e-01 : f32
      %65 = vector.broadcast %cst_39 : f32 to vector<8x1xf32>
      %66 = arith.cmpf ogt, %59, %65 : vector<8x1xf32>
      %67 = arith.andi %64, %66 : vector<8x1xi1>
      %68 = arith.extui %67 : vector<8x1xi1> to vector<8x1xi32>
      %69 = arith.sitofp %68 : vector<8x1xi32> to vector<8x1xf32>
      %c256_i32_40 = arith.constant 256 : i32
      %70 = arith.muli %arg1, %c256_i32_40 : i32
      %c255_i32_41 = arith.constant 255 : i32
      %71 = arith.subi %c255_i32_41, %70 : i32
      %c0_i32_42 = arith.constant 0 : i32
      %c1_i32_43 = arith.constant 1 : i32
      %72 = arith.maxsi %c0_i32_42, %71 : i32
      %73 = arith.minsi %c1_i32_43, %72 : i32
      %74 = arith.sitofp %73 : i32 to f32
      %75 = arith.cmpf ogt, %56, %59 : vector<8x1xf32>
      %76 = arith.cmpf ogt, %56, %57 : vector<8x1xf32>
      %77 = arith.andi %75, %76 : vector<8x1xi1>
      %cst_44 = arith.constant 3.000000e-01 : f32
      %78 = vector.broadcast %cst_44 : f32 to vector<8x1xf32>
      %79 = arith.cmpf ogt, %56, %78 : vector<8x1xf32>
      %80 = arith.andi %77, %79 : vector<8x1xi1>
      %81 = arith.extui %80 : vector<8x1xi1> to vector<8x1xi32>
      %82 = arith.sitofp %81 : vector<8x1xi32> to vector<8x1xf32>
      %83 = vector.broadcast %74 : f32 to vector<8x1xf32>
      %84 = arith.mulf %82, %83 : vector<8x1xf32>
      %c0_45 = arith.constant 0 : index
      %c0_46 = arith.constant 0 : index
      %85 = vector.load %arg5[%c0_45, %c0_46] : memref<8x1xf32, #tpu.memory_space<vmem>>, vector<8x1xf32>
      %86 = arith.addf %69, %84 : vector<8x1xf32>
      %87 = arith.addf %85, %86 : vector<8x1xf32>
      %c0_47 = arith.constant 0 : index
      %c0_48 = arith.constant 0 : index
      %88 = vector.load %arg5[%c0_47, %c0_48] : memref<8x1xf32, #tpu.memory_space<vmem>>, vector<8x1xf32>
      tpu.vector_store %arg5[%c0_47, %c0_48], %87 {strides = array<i32>} : memref<8x1xf32, #tpu.memory_space<vmem>>, vector<8x1xf32>,
      %c0_49 = arith.constant 0 : index
      %c0_50 = arith.constant 0 : index
      %89 = vector.load %arg6[%c0_49, %c0_50] : memref<8x1xf32, #tpu.memory_space<vmem>>, vector<8x1xf32>
      %cst_51 = arith.constant 5.000000e-01 : f32
      %90 = vector.broadcast %cst_51 : f32 to vector<8x1xf32>
      %91 = arith.cmpf ogt, %69, %90 : vector<8x1xf32>
      %cst_52 = arith.constant 1.000000e+30 : f32
      %92 = vector.broadcast %cst_52 : f32 to vector<8x1xf32>
      %93 = arith.select %91, %61, %92 : vector<8x1xi1>, vector<8x1xf32>
      %cst_53 = arith.constant 5.000000e-01 : f32
      %94 = vector.broadcast %cst_53 : f32 to vector<8x1xf32>
      %95 = arith.cmpf ogt, %84, %94 : vector<8x1xf32>
      %cst_54 = arith.constant 1.000000e+30 : f32
      %96 = vector.broadcast %cst_54 : f32 to vector<8x1xf32>
      %97 = arith.select %95, %58, %96 : vector<8x1xi1>, vector<8x1xf32>
      %98 = arith.minimumf %93, %97 : vector<8x1xf32>
      %99 = arith.minimumf %89, %98 : vector<8x1xf32>
      %c0_55 = arith.constant 0 : index
      %c0_56 = arith.constant 0 : index
      %100 = vector.load %arg6[%c0_55, %c0_56] : memref<8x1xf32, #tpu.memory_space<vmem>>, vector<8x1xf32>
      tpu.vector_store %arg6[%c0_55, %c0_56], %99 {strides = array<i32>} : memref<8x1xf32, #tpu.memory_space<vmem>>, vector<8x1xf32>,
      %c0_57 = arith.constant 0 : index
      %c0_58 = arith.constant 0 : index
      %101 = vector.load %arg7[%c0_57, %c0_58] : memref<8x1xf32, #tpu.memory_space<vmem>>, vector<8x1xf32>
      %cst_59 = arith.constant 5.000000e-01 : f32
      %102 = vector.broadcast %cst_59 : f32 to vector<8x1xf32>
      %103 = arith.cmpf ogt, %69, %102 : vector<8x1xf32>
      %cst_60 = arith.constant -1.000000e+30 : f32
      %104 = vector.broadcast %cst_60 : f32 to vector<8x1xf32>
      %105 = arith.select %103, %61, %104 : vector<8x1xi1>, vector<8x1xf32>
      %cst_61 = arith.constant 5.000000e-01 : f32
      %106 = vector.broadcast %cst_61 : f32 to vector<8x1xf32>
      %107 = arith.cmpf ogt, %84, %106 : vector<8x1xf32>
      %cst_62 = arith.constant -1.000000e+30 : f32
      %108 = vector.broadcast %cst_62 : f32 to vector<8x1xf32>
      %109 = arith.select %107, %58, %108 : vector<8x1xi1>, vector<8x1xf32>
      %110 = arith.maximumf %105, %109 : vector<8x1xf32>
      %111 = arith.maximumf %101, %110 : vector<8x1xf32>
      %c0_63 = arith.constant 0 : index
      %c0_64 = arith.constant 0 : index
      %112 = vector.load %arg7[%c0_63, %c0_64] : memref<8x1xf32, #tpu.memory_space<vmem>>, vector<8x1xf32>
      tpu.vector_store %arg7[%c0_63, %c0_64], %111 {strides = array<i32>} : memref<8x1xf32, #tpu.memory_space<vmem>>, vector<8x1xf32>,
    } else {
    }
    %47 = vector.extract_strided_slice %3 {offsets = [0, 255], sizes = [8, 1], strides = [1, 1]} : vector<8x256xf32> to vector<8x1xf32>
    %c0_25 = arith.constant 0 : index
    %c0_26 = arith.constant 0 : index
    %48 = vector.load %arg8[%c0_25, %c0_26] : memref<8x1xf32, #tpu.memory_space<vmem>>, vector<8x1xf32>
    tpu.vector_store %arg8[%c0_25, %c0_26], %47 {strides = array<i32>} : memref<8x1xf32, #tpu.memory_space<vmem>>, vector<8x1xf32>,
    %49 = vector.extract_strided_slice %3 {offsets = [0, 254], sizes = [8, 1], strides = [1, 1]} : vector<8x256xf32> to vector<8x1xf32>
    %c0_27 = arith.constant 0 : index
    %c0_28 = arith.constant 0 : index
    %50 = vector.load %arg9[%c0_27, %c0_28] : memref<8x1xf32, #tpu.memory_space<vmem>>, vector<8x1xf32>
    tpu.vector_store %arg9[%c0_27, %c0_28], %49 {strides = array<i32>} : memref<8x1xf32, #tpu.memory_space<vmem>>, vector<8x1xf32>,
    %51 = vector.extract_strided_slice %4 {offsets = [0, 255], sizes = [8, 1], strides = [1, 1]} : vector<8x256xf32> to vector<8x1xf32>
    %c0_29 = arith.constant 0 : index
    %c0_30 = arith.constant 0 : index
    %52 = vector.load %arg10[%c0_29, %c0_30] : memref<8x1xf32, #tpu.memory_space<vmem>>, vector<8x1xf32>
    tpu.vector_store %arg10[%c0_29, %c0_30], %51 {strides = array<i32>} : memref<8x1xf32, #tpu.memory_space<vmem>>, vector<8x1xf32>,
    %c0_i32_31 = arith.constant 0 : i32
    %53 = arith.cmpi eq, %arg1, %c0_i32_31 : i32
    %54 = arith.extui %53 : i1 to i32
    %c0_i32_32 = arith.constant 0 : i32
    %55 = arith.cmpi ne, %54, %c0_i32_32 : i32
    scf.if %55 {
      %c0_33 = arith.constant 0 : index
      %c0_34 = arith.constant 0 : index
      %56 = vector.load %arg5[%c0_33, %c0_34] : memref<8x1xf32, #tpu.memory_space<vmem>>, vector<8x1xf32>
      %c0_35 = arith.constant 0 : index
      %c0_36 = arith.constant 0 : index
      %57 = vector.load %arg7[%c0_35, %c0_36] : memref<8x1xf32, #tpu.memory_space<vmem>>, vector<8x1xf32>
      %c0_37 = arith.constant 0 : index
      %c0_38 = arith.constant 0 : index
      %58 = vector.load %arg6[%c0_37, %c0_38] : memref<8x1xf32, #tpu.memory_space<vmem>>, vector<8x1xf32>
      %59 = arith.subf %57, %58 : vector<8x1xf32>
      %cst_39 = arith.constant 2.000000e+00 : f32
      %60 = vector.broadcast %cst_39 : f32 to vector<8x1xf32>
      %61 = arith.cmpf oge, %56, %60 : vector<8x1xf32>
      %cst_40 = arith.constant 1.000000e+00 : f32
      %62 = vector.broadcast %cst_40 : f32 to vector<8x1xf32>
      %63 = arith.subf %56, %62 : vector<8x1xf32>
      %cst_41 = arith.constant 6.000000e+01 : f32
      %64 = vector.broadcast %cst_41 : f32 to vector<8x1xf32>
      %65 = arith.mulf %64, %63 : vector<8x1xf32>
      %cst_42 = arith.constant 9.99999997E-7 : f32
      %66 = vector.broadcast %cst_42 : f32 to vector<8x1xf32>
      %67 = arith.maximumf %59, %66 : vector<8x1xf32>
      %68 = arith.divf %65, %67 : vector<8x1xf32>
      %cst_43 = arith.constant 0.000000e+00 : f32
      %69 = vector.broadcast %cst_43 : f32 to vector<8x1xf32>
      %70 = arith.select %61, %68, %69 : vector<8x1xi1>, vector<8x1xf32>
      %c0_44 = arith.constant 0 : index
      %c0_45 = arith.constant 0 : index
      %71 = vector.load %arg4[%c0_44, %c0_45] : memref<8x1xf32, #tpu.memory_space<vmem>>, vector<8x1xf32>
      tpu.vector_store %arg4[%c0_44, %c0_45], %70 {strides = array<i32>} : memref<8x1xf32, #tpu.memory_space<vmem>>, vector<8x1xf32>,
    } else {
    }
    return
  }
  func.func @transform_0(%arg0: i32, %arg1: i32) -> (i32, i32) {
    %c0_i32 = arith.constant 0 : i32
    return %arg0, %arg1 : i32, i32
  }
  func.func @transform_1(%arg0: i32, %arg1: i32) -> (i32, i32) {
    %c0_i32 = arith.constant 0 : i32
    return %arg0, %arg1 : i32, i32
  }
  func.func @transform_2(%arg0: i32, %arg1: i32) -> (i32, i32) {
    %c0_i32 = arith.constant 0 : i32
    %c0_i32_0 = arith.constant 0 : i32
    return %arg0, %c0_i32 : i32, i32
  }
}

</mosaic_0001>

<bundles_post_ra>
// kernel: tpu_custom_call.1
= control target key start
LH: loop header
LB: loop body
LE: loop exit
PB: predicated region body
PF: predicated region fallthrough
CT: control target
= control target key end

     0   :  { %7 = vsyncpa [#allocation9], 0  ;;  %s322_s0 = inlined_call_operand.hbm [shape: f32[8,256], index: 0, kind: input, shape index: {}]   ;;  %s323_s1 = inlined_call_operand.hbm [shape: f32[8,256], index: 1, kind: input, shape index: {}]   ;;  %s324_s2 = inlined_call_operand.vmem [shape: f32[8,1], index: 2, kind: output, shape index: {}]  }
   0x1   :  { %s14_s11 = sshll.u32 %s322_s0, 4  ;;  %s15_s11 = int_to_ptr.hbm [resolvable:$true] %s14_s11 }
   0x2   :  { %8 = vsyncpa [#allocation11], 0  ;;  %s283_s12 = smov [#allocation8]   ;;  %s25_s16 = sshll.u32 %s323_s1, 4  ;;  %s26_s16 = int_to_ptr.hbm [resolvable:$true] %s25_s16 }
   0x3   :  { %s16_s13 = sshll.u32 %s283_s12, 4  ;;  %s284_s17 = smov [#allocation10]   ;;  %s17_s13 = int_to_ptr.vmem [resolvable:$true] %s16_s13 }
   0x4   :  { %19 = dma.hbm_to_vmem [thread:$0]  %s15_s11, 256, %s17_s13, [#allocation9]  }
   0x5   :  { %s27_s18 = sshll.u32 %s284_s17, 4  ;;  %s28_s18 = int_to_ptr.vmem [resolvable:$true] %s27_s18 }
   0x6   :  { %30 = dma.hbm_to_vmem [thread:$0]  %s26_s16, 256, %s28_s18, [#allocation11]  }
   0x7   :  { %279 = dma.done.wait [#allocation9], 256  }
   0x8   :  { %280 = vsyncadd [#allocation9], 4294967040 }
   0x9   :  { %281 = dma.done.wait [#allocation11], 256  }
   0xa   :  { %282 = vsyncadd [#allocation11], 4294967040  ;;  %v47_v0 = vld [vmem:[#allocation8] sm:$0xff]  ;;  %s285_s0 = smov 127   ;;  %s286_s19 = smov 1   ;;  %v48_v1 = vld [vmem:[#allocation8 + $0x8] sm:$0xff]  ;;  %v51_v4 = vlaneseq }
   0xb   :  { %65 = vrot.lane.b32.xlu1 %v47_v0, %s285_s0  ;;  %58 = vrot.lane.b32.xlu0 %v47_v0, %s286_s19  ;;  %v50_v2 = vld [vmem:[#allocation10 + $0x8] sm:$0xff]  ;;  %vm325_vm0 = vcmask 7168   ;;  %v287_v3 = vmov 0.0   ;;  %vm78_vm3 = vcmp.gt.f32.partialorder %v47_v0, 0.3  ;;  %v49_v15 = vld [vmem:[#allocation10] sm:$0xff] }
   0xc   :  { %44 = vst.msk [vmem:[#allocation2] sm:$0xff] %vm325_vm0, %v287_v3  ;;  %v52_v7 = vand.u32 127, %v51_v4  ;;  %vm79_vm9 = vcmp.gt.f32.partialorder %v48_v1, 0.3  ;;  %v288_v22 = vmov 1e+30  }
   0xd   :  { %s289_s1 = smov 2   ;;  %v290_v26 = vmov -1e+30  }
   0xe   :  { %vm69_vm1 = vcmp.lt.s32.totalorder %v52_v7, 127  ;;  %vm62_vm2 = vcmp.lt.s32.totalorder %v52_v7, 1  ;;  %v53_v10 = vadd.s32 128, %v52_v7  ;;  %vm82_vm11 = vcmp.ge.s32.totalorder %v52_v7, 1 }
  0x10   :  { %vm88_vm13 = vcmp.le.s32.totalorder %v53_v10, 254 }
  0x13   :  { %67 = vrot.lane.b32.xlu1 %v48_v1, %s285_s0  ;;  %60 = vrot.lane.b32.xlu0 %v48_v1, %s286_s19  ;;  %v91_v28 = vld [vmem:[#allocation2] sm:$0xff] }
  0x1b   :  { %169 = vrot.lane.b32.xlu1 %v48_v1, %s286_s19 }
  0x23   :  { %178 = vrot.lane.b32.xlu1 %v50_v2, %s286_s19 }
  0x7d   :  { %v66_v5 = vpop.permute.xlu1 %65  ;;  %v59_v6 = vpop.permute.xlu0 %58 }
  0x85   :  { %v68_v8 = vpop.permute.xlu1 %67  ;;  %v61_v9 = vpop.permute.xlu0 %60 }
  0x86   :  { %v70_v11 = vsel %vm69_vm1, %v66_v5, %v68_v8  ;;  %v71_v12 = vsel %vm69_vm1, %v68_v8, %v66_v5  ;;  %v63_v13 = vsel %vm62_vm2, %v59_v6, %v61_v9  ;;  %v64_v14 = vsel %vm62_vm2, %v61_v9, %v59_v6 }
  0x87   :  { %vm74_vm4 = vcmp.gt.f32.partialorder %v47_v0, %v70_v11  ;;  %vm75_vm5 = vcmp.gt.f32.partialorder %v48_v1, %v71_v12  ;;  %vm72_vm6 = vcmp.gt.f32.partialorder %v47_v0, %v64_v14  ;;  %vm73_vm7 = vcmp.gt.f32.partialorder %v48_v1, %v63_v13 }
  0x88   :  { %vm76_vm8 = vmand %vm72_vm6, %vm74_vm4  ;;  %vm326_vm1 = vcmask 7168  }
  0x89   :  { %vm77_vm10 = vmand %vm73_vm7, %vm75_vm5  ;;  %45 = vst.msk [vmem:[#allocation3] sm:$0xff] %vm326_vm1, %v288_v22 }
  0x8a   :  { %vm80_vm12 = vmand %vm76_vm8, %vm78_vm3 }
  0x8b   :  { %vm81_vm14 = vmand %vm77_vm10, %vm79_vm9 }
  0x8c   :  { %vm84_vm15 = vmand %vm80_vm12, %vm82_vm11 }
  0x8d   :  { %vm90_vm0 = vmand %vm81_vm14, %vm88_vm13  ;;  %v103_v16 = vsel %vm84_vm15, %v49_v15, 1e+30  ;;  %v216_v17 = vsel %vm84_vm15, 1.0, %v287_v3  ;;  %v111_v23 = vsel %vm84_vm15, %v49_v15, -1e+30  ;;  %v170_v33 = vpop.permute.xlu1 %169 }
  0x8e   :  { %v104_v18 = vsel %vm90_vm0, %v50_v2, 1e+30  ;;  %v217_v19 = vsel %vm90_vm0, 1.0, %v287_v3  ;;  %v112_v24 = vsel %vm90_vm0, %v50_v2, -1e+30  ;;  %vm327_vm2 = vmmov %vm326_vm1 }
  0x8f   :  { %v105_v20 = vmin.f32 %v103_v16, %v104_v18  ;;  %v96_v21 = vadd.f32 %v217_v19, %v216_v17  ;;  %v113_v25 = vmax.f32 %v111_v23, %v112_v24  ;;  %46 = vst.msk [vmem:[#allocation4] sm:$0xff] %vm327_vm2, %v290_v26  ;;  %vm328_vm3 = vmmov %vm326_vm1 }
  0x90   :  { %v102_v27 = vld [vmem:[#allocation3] sm:$0xff]  ;;  %vm329_vm4 = vmmov %vm326_vm1 }
  0x91   :  { %106 = vmin.xlane.f32.xlu2 %v105_v20  ;;  %97 = vadd.xlane.f32.xlu0 %v96_v21  ;;  %vm330_vm0 = vmmov %vm326_vm1 }
  0x92   :  { %vm331_vm10 = vmmov %vm330_vm0 }
  0x95   :  { %v179_v37 = vpop.permute.xlu1 %178 }
  0x96   :  { %v110_v34 = vld [vmem:[#allocation4] sm:$0xff] }
  0x99   :  { %114 = vmax.xlane.f32.xlu2 %v113_v25 }
  0xb1   :  { %173 = vrot.lane.b32.xlu2 %v48_v1, %s289_s1 }
 0x104   :  { %v107_v29 = vpop.xlane.xlu2 %106  ;;  %v98_v30 = vpop.xlane.xlu0 %97 }
 0x105   :  { %v108_v31 = vmin.f32 %v102_v27, %v107_v29  ;;  %v99_v32 = vadd.f32 %v98_v30, %v91_v28 }
 0x107   :  { %109 = vst.msk [vmem:[#allocation3] sm:$0xff] %vm328_vm3, %v108_v31 }
 0x108   :  { %101 = vst.msk [vmem:[#allocation2] sm:$0xff] %vm329_vm4, %v99_v32 }
 0x10c   :  { %v115_v35 = vpop.xlane.xlu2 %114 }
 0x10d   :  { %v116_v36 = vmax.f32 %v110_v34, %v115_v35 }
 0x10e   :  { %v187_v39 = vld [vmem:[#allocation3] sm:$0xff] }
 0x10f   :  { %117 = vst.msk [vmem:[#allocation4] sm:$0xff] %vm330_vm0, %v116_v36  ;;  %v185_v45 = vld [vmem:[#allocation2] sm:$0xff] }
 0x110   :  { %v220_v48 = vadd.f32 -1.0, %v185_v45  ;;  %vm189_vm9 = vcmp.ge.f32.partialorder %v185_v45, 2.0 }
 0x112   :  { %v191_v53 = vmul.f32 60.0, %v220_v48 }
 0x114   :  { %v174_v38 = vpop.permute.xlu2 %173 }
 0x116   :  { %v186_v40 = vld [vmem:[#allocation4] sm:$0xff] }
 0x117   :  { %v188_v41 = vsub.f32 %v186_v40, %v187_v39 }
 0x119   :  { %v192_v42 = vmax.f32 %v188_v41, 1e-06 }
 0x11b   :  { %229 = vrcp.f32 %v192_v42  ;;  %v204_v47 = vand.u32 2147483648, %v192_v42  ;;  %v202_v50 = vand.u32 2147483647, %v192_v42  ;;  %vm198_vm6 = vweird.f32 %v192_v42 }
 0x11d   :  { %v205_v52 = vor.u32 1.1754944e-38, %v204_v47  ;;  %vm203_vm8 = vcmp.eq.f32.partialorder %v202_v50, 8.507059e+37 }
 0x121   :  { %v230_v43 = vpop.eup %229 }
 0x122   :  { %v194_v44 = vmul.f32 %v230_v43, %v192_v42  ;;  %vm199_vm5 = vweird.f32 %v230_v43 }
 0x123   :  { %vm200_vm7 = vmor %vm198_vm6, %vm199_vm5 }
 0x124   :  { %v195_v46 = vsub.f32 1.0, %v194_v44 }
 0x126   :  { %v196_v49 = vmul.f32 %v230_v43, %v195_v46 }
 0x128   :  { %v197_v51 = vadd.f32 %v230_v43, %v196_v49 }
 0x12a   :  { %v201_v54 = vsel %vm200_vm7, %v230_v43, %v197_v51 }
 0x12b   :  { %v206_v55 = vsel %vm203_vm8, %v205_v52, %v201_v54 }
 0x12c   :  { %v207_v56 = vmul.f32 %v206_v55, %v191_v53 }
 0x12e   :  { %v208_v57 = vsel %vm189_vm9, %v207_v56, 0.0 }
 0x12f   :  { %209 = vst.msk [vmem:[%s324_s2] sm:$0xff] %vm331_vm10, %v208_v57 }
 0x130   :  { %214 = vsyncpa [#allocation9], 1 }
 0x131   :  { %215 = vsyncpa [#allocation11], 1 }

</bundles_post_ra>
